<compile_context>
chip_gen: v6e
topology: v6e:2x2x1
jax: 0.10.0
libtpu: 0.0.40
codegen_flags: <defaults>
</compile_context>

<pallas_src>
import jax
import jax.numpy as jnp
from jax.experimental import pallas as pl
from jax.experimental.pallas import tpu as pltpu


def _round_up(x, m):
    return (x + m - 1) // m * m


def _patch_embed_kernel(p_ref, w_ref, pe_ref, o_ref):
    # p_ref:  (TN, K)  bf16 patch rows for one (batch, N-tile)
    # w_ref:  (K, Ep)  bf16 projection weight (grid-invariant)
    # pe_ref: (TN, Ep) f32 positional embedding with conv bias pre-folded
    # o_ref:  (TN, Ep) output tile
    acc = jnp.dot(p_ref[...], w_ref[...], preferred_element_type=jnp.float32)
    o_ref[...] = (acc + pe_ref[...]).astype(o_ref.dtype)


def patch_embedding(x, weight, bias, pos_embed, patch_size, *,
                    compute_dtype=jnp.bfloat16, n_tile=512):
    """x: (B, C, H, W); weight: (E, C, P, P); bias: (E,); pos_embed: (1, N, E).

    Returns (B, N, E) with N = (H//P) * (W//P), matching
    Conv2d(stride=kernel).flatten(2).transpose(1, 2) + pos_embed.
    """
    B, C, H, W = x.shape
    E = weight.shape[0]
    P = patch_size
    Hp, Wp = H // P, W // P
    N = Hp * Wp
    K = C * P * P
    out_dtype = x.dtype

    # Lane-dense output: pad E up to a multiple of 128 (no-op for real ViT dims).
    Ep = _round_up(E, 128)

    # ---- host-side glue (im2col), done in compute_dtype to halve the copy ----
    # TODO(synk): fuse the patch-extraction transpose into the kernel (grid over
    # patch-row bands of x) to remove this extra HBM round-trip entirely.
    xc = x.astype(compute_dtype)
    patches = xc.reshape(B, C, Hp, P, Wp, P)
    patches = patches.transpose(0, 2, 4, 1, 3, 5).reshape(B, N, K)

    # Conv2d weight (E, C, P, P) -> matmul weight (K, E), padded, bf16.
    w_mat = weight.reshape(E, K).T.astype(compute_dtype)
    if Ep != E:
        w_mat = jnp.pad(w_mat, ((0, 0), (0, Ep - E)))

    # Fold the conv bias into the positional embedding (f32 epilogue).
    pe_mat = (pos_embed.reshape(N, E).astype(jnp.float32)
              + bias.reshape(1, E).astype(jnp.float32))
    if Ep != E:
        pe_mat = jnp.pad(pe_mat, ((0, 0), (0, Ep - E)))

    # ---- tiling over N --------------------------------------------------------
    if N <= n_tile:
        TN = N                              # full extent (exempt from (8,128))
    else:
        TN = max(8, (n_tile // 8) * 8)      # multiple of 8; edge tiles masked
    n_tiles = pl.cdiv(N, TN)

    # Explicit VMEM budget derived from the tile sizes (+ headroom).
    in_item = jnp.dtype(compute_dtype).itemsize
    out_item = jnp.dtype(out_dtype).itemsize
    vmem_bytes = (2 * TN * K * in_item        # patch tiles, double-buffered
                  + 2 * K * Ep * in_item      # weight, double-buffered
                  + 2 * TN * Ep * 4           # pos_embed tiles (f32)
                  + 2 * TN * Ep * out_item)   # output tiles
    vmem_limit = int(min(max(2 * vmem_bytes + (8 << 20), 16 << 20), 64 << 20))

    # `None` block dims are squeezed out of the kernel-visible refs.
    p_spec = pl.BlockSpec((None, TN, K), lambda b, n: (b, n, 0))
    w_spec = pl.BlockSpec((K, Ep), lambda b, n: (0, 0))
    pe_spec = pl.BlockSpec((TN, Ep), lambda b, n: (n, 0))
    o_spec = pl.BlockSpec((None, TN, Ep), lambda b, n: (b, n, 0))

    out = pl.pallas_call(
        _patch_embed_kernel,
        out_shape=jax.ShapeDtypeStruct((B, N, Ep), out_dtype),
        grid_spec=pltpu.PrefetchScalarGridSpec(
            num_scalar_prefetch=0,
            grid=(B, n_tiles),
            in_specs=[p_spec, w_spec, pe_spec],
            out_specs=o_spec,
        ),
        compiler_params=pltpu.CompilerParams(
            dimension_semantics=("parallel", "parallel"),
            vmem_limit_bytes=vmem_limit),
    )(patches, w_mat, pe_mat)

    if Ep != E:
        out = out[:, :, :E]
    return out


def _reference(x, weight, bias, pos_embed, patch_size):
    """Plain-JAX reference matching PyTorch Conv2d(stride=kernel)+flatten+transpose."""
    out = jax.lax.conv_general_dilated(
        x, weight,
        window_strides=(patch_size, patch_size),
        padding="VALID",
        dimension_numbers=("NCHW", "OIHW", "NCHW"),
    )  # (B, E, Hp, Wp)
    B, E, Hp, Wp = out.shape
    out = out + bias.reshape(1, E, 1, 1)
    out = out.reshape(B, E, Hp * Wp).transpose(0, 2, 1)  # (B, N, E)
    return out + pos_embed


if __name__ == "__main__":
    # Shapes implied by the module defaults: img_size=32, patch_size=4,
    # in_channels=3, embed_dim=64  ->  num_patches = 64
    B, C, H, W = 2, 3, 32, 32
    P = 4
    E = 64
    N = (H // P) * (W // P)

    key = jax.random.PRNGKey(0)
    kx, kw, kb, kp = jax.random.split(key, 4)

    x = jax.random.normal(kx, (B, C, H, W), dtype=jnp.float32)
    weight = jax.random.normal(kw, (E, C, P, P), dtype=jnp.float32) * 0.05
    bias = jax.random.normal(kb, (E,), dtype=jnp.float32) * 0.05
    # PyTorch initializes pos_embed to zeros; use small random values here to
    # exercise the add path deterministically.
    pos_embed = jax.random.normal(kp, (1, N, E), dtype=jnp.float32) * 0.02

    fn = jax.jit(patch_embedding, static_argnums=(4,))
    out = fn(x, weight, bias, pos_embed, P)
    out = jax.block_until_ready(out)

    ref = _reference(x, weight, bias, pos_embed, P)
    assert out.shape == (B, N, E), out.shape
    # bf16 MXU inputs with f32 accumulation -> loosen tolerance slightly.
    assert jnp.allclose(out, ref, atol=2e-2, rtol=2e-2), "mismatch vs reference"

    print("KERNEL_OK")
</pallas_src>

<mosaic_0001>
module attributes {stable_mosaic.version = 11 : i64} {
  func.func @_patch_embed_kernel(%arg0: i32, %arg1: i32, %arg2: memref<1x64x48xbf16, #tpu.memory_space<vmem>>, %arg3: memref<48x128xbf16, #tpu.memory_space<vmem>>, %arg4: memref<64x128xf32, #tpu.memory_space<vmem>>, %arg5: memref<1x64x128xf32, #tpu.memory_space<vmem>>) attributes {dimension_semantics = [#tpu.dimension_semantics<parallel>, #tpu.dimension_semantics<parallel>], iteration_bounds = array<i64: 2, 1>, scalar_prefetch = 0 : i64, scratch_operands = 0 : i64, tpu.core_type = #tpu.core_type<tc>, window_params = [{transform_indices = @transform_0, window_bounds = array<i64: 1, 64, 48>}, {pipeline_mode = #tpu.pipeline_mode<synchronous>, transform_indices = @transform_1, window_bounds = array<i64: 48, 128>}, {transform_indices = @transform_2, window_bounds = array<i64: 64, 128>}, {transform_indices = @transform_3, window_bounds = array<i64: 1, 64, 128>}]} {
    %c0 = arith.constant 0 : index
    %c0_0 = arith.constant 0 : index
    %c0_1 = arith.constant 0 : index
    %0 = vector.load %arg2[%c0, %c0_0, %c0_1] : memref<1x64x48xbf16, #tpu.memory_space<vmem>>, vector<1x64x48xbf16>
    %1 = vector.shape_cast %0 : vector<1x64x48xbf16> to vector<64x48xbf16>
    %c0_2 = arith.constant 0 : index
    %c0_3 = arith.constant 0 : index
    %2 = vector.load %arg3[%c0_2, %c0_3] : memref<48x128xbf16, #tpu.memory_space<vmem>>, vector<48x128xbf16>
    %cst = arith.constant dense<0.000000e+00> : vector<64x128xf32>
    %3 = tpu.matmul %1, %2, %cst {dimension_numbers = #tpu.dot_dimension_numbers<[1], [0], [0], [1], [0, 0, 1, 1], [], []>} : vector<64x48xbf16>, vector<48x128xbf16>, vector<64x128xf32> -> vector<64x128xf32>
    %c0_4 = arith.constant 0 : index
    %c0_5 = arith.constant 0 : index
    %4 = vector.load %arg4[%c0_4, %c0_5] : memref<64x128xf32, #tpu.memory_space<vmem>>, vector<64x128xf32>
    %5 = arith.addf %3, %4 : vector<64x128xf32>
    %c0_6 = arith.constant 0 : index
    %c0_7 = arith.constant 0 : index
    %c0_8 = arith.constant 0 : index
    %6 = vector.load %arg5[%c0_6, %c0_7, %c0_8] : memref<1x64x128xf32, #tpu.memory_space<vmem>>, vector<1x64x128xf32>
    %7 = vector.shape_cast %6 : vector<1x64x128xf32> to vector<64x128xf32>
    %8 = vector.shape_cast %5 : vector<64x128xf32> to vector<1x64x128xf32>
    tpu.vector_store %arg5[%c0_6, %c0_7, %c0_8], %8 {strides = array<i32>} : memref<1x64x128xf32, #tpu.memory_space<vmem>>, vector<1x64x128xf32>,
    return
  }
  func.func @transform_0(%arg0: i32, %arg1: i32) -> (i32, i32, i32) {
    %c0_i32 = arith.constant 0 : i32
    %c0_i32_0 = arith.constant 0 : i32
    return %arg0, %arg1, %c0_i32 : i32, i32, i32
  }
  func.func @transform_1(%arg0: i32, %arg1: i32) -> (i32, i32) {
    %c0_i32 = arith.constant 0 : i32
    %c0_i32_0 = arith.constant 0 : i32
    %c0_i32_1 = arith.constant 0 : i32
    return %c0_i32, %c0_i32_0 : i32, i32
  }
  func.func @transform_2(%arg0: i32, %arg1: i32) -> (i32, i32) {
    %c0_i32 = arith.constant 0 : i32
    %c0_i32_0 = arith.constant 0 : i32
    return %arg1, %c0_i32 : i32, i32
  }
  func.func @transform_3(%arg0: i32, %arg1: i32) -> (i32, i32, i32) {
    %c0_i32 = arith.constant 0 : i32
    %c0_i32_0 = arith.constant 0 : i32
    return %arg0, %arg1, %c0_i32 : i32, i32, i32
  }
}

</mosaic_0001>

<bundles_post_ra>
// kernel: patch_embedding.1
= control target key start
LH: loop header
LB: loop body
LE: loop exit
PB: predicated region body
PF: predicated region fallthrough
CT: control target
= control target key end

     0   :  { %8 = vsyncpa [#allocation3], 0  ;;  %s849_s0 = inlined_call_operand.vmem [shape: bf16[2,64,48], index: 0, kind: input, shape index: {}]   ;;  %s850_s1 = inlined_call_operand.vmem [shape: bf16[48,128], index: 1, kind: input, shape index: {}]   ;;  %s851_s2 = inlined_call_operand.vmem [shape: f32[64,128], index: 2, kind: input, shape index: {}]   ;;  %s852_s3 = inlined_call_operand.hbm [shape: f32[2,64,128], index: 3, kind: output, shape index: {}]  }
   0x1   :  { %10 = vsyncpa [#allocation3 + $0x1], 0  ;;  %s698_s12 = smov 0   ;;  %s700_s13 = smov 0  }
   0x2   :  { %s702_s14 = smov 0   ;;  %s704_s15 = smov 0  }
   0x3   :  { %s706_s16 = smov 0   ;;  %s708_s17 = smov 0  }
   0x4 LB: > { %s479_s18 = sadd.s32 4294967295, %s673_s17   ;;  %s480_s19 = sadd.s32 4294967294, %s673_s17   ;;  %s673_s17 = sphi %s708_s17, %s16_s17   ;;  %s669_s16 = sphi %s706_s16, %s859_s16   ;;  %s665_s15 = sphi %s704_s15, %s858_s15   ;;  %s661_s14 = sphi %s702_s14, %s857_s14   ;;  %s657_s13 = sphi %s700_s13, %s856_s13   ;;  %s653_s12 = sphi %s698_s12, %s855_s12  }
   0x5   : > { %s28_s20 = sadd.s32 1, %s669_s16  ;;  %s112_s21 = sadd.s32 1, %s661_s14 }
   0x6   : > { %p30_p0 = scmp.ge.s32.totalorder %s28_s20, 2  ;;  %p122_p1 = scmp.ne.s32.totalorder %s661_s14, %s657_s13 }
   0x7   : > { %p123_p2 = scmp.eq.s32.totalorder %s479_s18, 1  ;;  %p128_p3 = scmp.ne.s32.totalorder %s657_s13, %s653_s12 }
   0x8   : > { %s861_s20 = smov (%p30_p0, %s28_s20), 0  ;;  %p129_p5 = scmp.eq.s32.totalorder %s480_s19, 1 }
   0x9   : > { %p738_p4 = por %p123_p2, %p122_p1  ;;  %s107_s23 = ssub.s32 %s669_s16, %s861_s20 }
   0xa   : > { %p484_p6 = scmp.ge.s32.totalorder %s673_s17, 1  ;;  %p110_p7 = scmp.eq.s32.totalorder %s107_s23, 0 }
   0xb   : > { %p745_p8 = por %p129_p5, %p128_p3  ;;  %p172_p9 = scmp.lt.s32.totalorder %s673_s17, 3 }
   0xc   : > { %s751_s25 = scalar_select %p110_p7, %s661_s14, %s112_s21  }
   0xd   : > { %p173_p10 = pnand %p484_p6, %p172_p9 }
   0xe   : > { %p206_p11 = scmp.lt.s32.totalorder (!%p173_p10), %s665_s15, 1  ;;  %s202_s10 = sand.u32 (!%p173_p10), 1, %s657_s13  }
   0xf   : > { %176 = sbr.rel (%p173_p10) target bundleno = 248 (0xf8), region = 32  ;;  %s485_s11 = sshll.u32 (!%p173_p10), %s202_s10, 6 }
  0x10   : > { %s204_s7 = scalar_lea.vmem (!%p173_p10), [#allocation2], %s485_s11  ;;  %s505_s8 = sshll.u32 (!%p173_p10), %s665_s15, 10 }
  0x11   : > { %s798_s26 = scalar_lea.hbm (!%p173_p10), %s852_s3, %s505_s8  ;;  %s804_s27 = scalar_lea.sflag (!%p173_p10), [#allocation3], %s202_s10 }
  0x12   : > { %s675_s29 = smov (!%p173_p10), [#allocation2]  }
  0x14   : > { %v590_v0 = vld [vmem:[%s850_s1 + $0x10] sm:$0xff]   ;;  %v591_v1 = vld [vmem:[%s850_s1 + $0x8] sm:$0xff]   ;;  %s207_s30 = scalar_select %p206_p11, %s665_s15, 1  ;;  %v592_v2 = vld [vmem:[%s850_s1] sm:$0xff]   ;;  %vm283_vm0 = vcmask 392192  }
  0x15   : > { %513 = vmatprep.subr.bf16.mxu0 %v590_v0  ;;  %527 = vmatprep.subr.bf16.mxu1 %v590_v0  ;;  %v239_v7 = vld [vmem:[%s851_s2 + $0x10] sm:$0xff]  ;;  %v237_v11 = vld [vmem:[%s851_s2] sm:$0xff]  ;;  %v240_v17 = vld [vmem:[%s851_s2 + $0x18] sm:$0xff] }
  0x16   : > { %514 = vmatpush3.bf16.msra.mxu0 %v590_v0  ;;  %530 = vmatpush3.bf16.msra.mxu1 %v590_v0  ;;  %s504_s6 = sshll.u32 %s207_s30, 5  ;;  %v243_v8 = vld [vmem:[%s851_s2 + $0x30] sm:$0xff]  ;;  %v241_v12 = vld [vmem:[%s851_s2 + $0x20] sm:$0xff]  ;;  %v244_v18 = vld [vmem:[%s851_s2 + $0x38] sm:$0xff]  ;;  %s601_s30 = sshll.u32 %s675_s29, 4  ;;  %s602_s30 = int_to_ptr.vmem [resolvable:$false] %s601_s30 }
  0x17   : > { %515 = vmatprep.subr.bf16.mxu0 %v591_v1  ;;  %528 = vmatprep.subr.bf16.mxu1 %v591_v1  ;;  %s213_s9 = scalar_lea.vmem %s849_s0, %s504_s6  ;;  %v238_v23 = vld [vmem:[%s851_s2 + $0x8] sm:$0xff]  ;;  %s603_s4 = scalar_lea.vmem %s602_s30, 2048 }
  0x18   : > { %v593_v3 = vld [vmem:[%s213_s9] sm:$0xff]   ;;  %v594_v4 = vld [vmem:[%s213_s9 + $0x10] sm:$0xff]   ;;  %v595_v5 = vld [vmem:[%s213_s9 + $0x8] sm:$0xff]  }
  0x19   : > { %519 = vmatprep.mubr.msk.bf16.mxu0 %vm283_vm0, %v593_v3  ;;  %523 = vmatprep.mubr.msk.bf16.mxu1 %vm283_vm0, %v594_v4  ;;  %v596_v6 = vld [vmem:[%s213_s9 + $0x18] sm:$0xff]   ;;  %s385_s9 = sshll.u32 %s204_s7, 4  ;;  %v242_v24 = vld [vmem:[%s851_s2 + $0x28] sm:$0xff]  ;;  %s800_s9 = int_to_ptr.vmem [resolvable:$true] %s385_s9 }
  0x1a   : > { %516 = vmatpush3.bf16.msra.mxu0 %v591_v1  ;;  %531 = vmatpush3.bf16.msra.mxu1 %v591_v1  ;;  %s597_s28 = scalar_lea.vmem %s800_s9, 1024  ;;  %p604_p1 = scmp.lt.s32.totalorder %s800_s9, %s602_s30 }
  0x1b   : > { %517 = vmatprep.subr.bf16.mxu0 %v592_v2  ;;  %529 = vmatprep.subr.bf16.mxu1 %v592_v2  ;;  %p598_p12 = scmp.ne.s32.totalorder %s800_s9, %s597_s28  ;;  %p605_p2 = scmp.lt.s32.totalorder %s603_s4, %s597_s28 }
  0x1d   : > { %p599_p13 = pnand %p598_p12, %p738_p4  ;;  %p606_p3 = por %p605_p2, %p604_p1 }
  0x1e   : > { %518 = vmatpush3.bf16.msra.mxu0 %v592_v2  ;;  %532 = vmatpush3.bf16.msra.mxu1 %v592_v2 }
  0x1f   : > { %p600_p0 = pneg %p599_p13 }
  0x21   : > { %520 = vmatmul.mubr.msk.bf16.vlgmr.msra.gmra.mxu0 %vm283_vm0, %v595_v5  ;;  %524 = vmatmul.mubr.msk.bf16.vlgmr.msra.gmra.mxu1 %vm283_vm0, %v596_v6  ;;  %p607_p5 = pnand %p606_p3, %p600_p0 }
  0xe1   : > { %v521_v9 = vpop.f32.mrf.mxu0  ;;  %v525_v10 = vpop.f32.mrf.mxu1 }
  0xe2   : > { %v339_v13 = vadd.f32 %v521_v9, %v239_v7  ;;  %v355_v14 = vadd.f32 %v525_v10, %v243_v8 }
  0xe3   : > { %v330_v15 = vpop.f32.mrf.mxu0  ;;  %v346_v16 = vpop.f32.mrf.mxu1 }
  0xe4   : > { %363 = vst [vmem:[%s204_s7 + $0x10] sm:$0xff] %v339_v13  ;;  %367 = vst [vmem:[%s204_s7 + $0x30] sm:$0xff] %v355_v14  ;;  %v331_v19 = vadd.f32 %v330_v15, %v237_v11  ;;  %v347_v20 = vadd.f32 %v346_v16, %v241_v12 }
  0xe5   : > { %v522_v21 = vpop.f32.mrf.mxu0  ;;  %v526_v22 = vpop.f32.mrf.mxu1 }
  0xe6   : > { %361 = vst [vmem:[%s204_s7] sm:$0xff] %v331_v19  ;;  %365 = vst [vmem:[%s204_s7 + $0x20] sm:$0xff] %v347_v20  ;;  %v342_v25 = vadd.f32 %v522_v21, %v240_v17  ;;  %v358_v26 = vadd.f32 %v526_v22, %v244_v18 }
  0xe7   : > { %v333_v27 = vpop.f32.mrf.mxu0  ;;  %v349_v28 = vpop.f32.mrf.mxu1 }
  0xe8   : > { %364 = vst [vmem:[%s204_s7 + $0x18] sm:$0xff] %v342_v25  ;;  %368 = vst [vmem:[%s204_s7 + $0x38] sm:$0xff] %v358_v26  ;;  %v334_v29 = vadd.f32 %v333_v27, %v238_v23  ;;  %v350_v30 = vadd.f32 %v349_v28, %v242_v24 }
  0xea   : > { %362 = vst [vmem:[%s204_s7 + $0x8] sm:$0xff] %v334_v29  ;;  %366 = vst [vmem:[%s204_s7 + $0x28] sm:$0xff] %v350_v30 }
  0xeb   : > { %610 = shalt.err (!%p607_p5)
}
  0xec   : > { %s611_s10 = scalar_lea.hbm %s798_s26, 1024  ;;  %s615_s7 = scalar_lea.hbm %s852_s3, 2048 }
  0xed   : > { %p612_p6 = scmp.ne.s32.totalorder %s798_s26, %s611_s10  ;;  %p616_p10 = scmp.lt.s32.totalorder %s798_s26, %s852_s3 }
  0xee   : > { %p617_p11 = scmp.lt.s32.totalorder %s615_s7, %s611_s10 }
  0xef   : > { %p613_p7 = pnand %p612_p6, %p738_p4 }
  0xf0   : > { %p618_p12 = por %p617_p11, %p616_p10 }
  0xf1   : > { %p614_p9 = pneg %p613_p7 }
  0xf3   : > { %p619_p13 = pnand %p618_p12, %p614_p9 }
  0xf5   : > { %622 = shalt.err (!%p619_p13)
}
  0xf6   : > { %s676_s19 = smov 128   ;;  %s677_s21 = smov 8  }
  0xf7   : > { %533 = dma.vmem_to_hbm [thread:$0]  (%p738_p4), %s800_s9, 1024, %s798_s26, %s804_s27, %s676_s19, %s676_s19, %s677_s21  }
  0xf8 PF: > { %p539_p0 = scmp.ge.s32.totalorder %s673_s17, 2  ;;  %s400_s23 = sand.u32 1, %s653_s12  }
  0xf9   : > { %s401_s15 = scalar_lea.sflag [#allocation3], %s400_s23 }
  0xfa   : > { %p536_p1 = pnand %p539_p0, %p745_p8 }
  0xfc   : > { %p537_p2 = pneg %p536_p1 }
  0xfe   : > { %648 = dma.done.wait (%p537_p2), %s401_s15, 1024  }
  0xff   : > { %650 = vsyncadd (%p537_p2), %s401_s15, 4294966272  ;;  %s16_s17 = sadd.s32 1, %s673_s17   ;;  %s855_s12 = smov %s657_s13 }
 0x100   : > { %p13_p3 = scmp.ge.s32.totalorder %s16_s17, 4   ;;  %s856_s13 = smov %s661_s14 }
 0x101   : > { %s857_s14 = smov %s751_s25  ;;  %s858_s15 = smov %s669_s16 }
 0x102   : > { %s859_s16 = smov %s861_s20  ;;  %15 = sbr.rel (!%p13_p3) target bundleno = 4 (0x4), region = 70 }
 0x107   :  { %406 = vsyncpa [#allocation3], 1 }
 0x108   :  { %408 = vsyncpa [#allocation3 + $0x1], 1 }

</bundles_post_ra>
